<compile_context>
chip_gen: v7x
topology: tpu7x:2x2x1
jax: 0.10.0
libtpu: 0.0.40
codegen_flags: <defaults>
</compile_context>

<pallas_src>
import jax
import jax.numpy as jnp
from jax.experimental import pallas as pl
from jax.experimental.pallas import tpu as pltpu

NZ = 10          # latent dim (nz); input feature dim is nz + 1 = 11
IN = NZ + 1      # 11
H1 = 6           # hidden width of first Linear
OUT = 7          # output width of second Linear

_LANE = 128
_TILE_B_DEFAULT = 1024   # sweet spot for pipelining; capped for tiny batches


def _round_up(n, m):
    return ((n + m - 1) // m) * m


def _mlp_kernel(xT_ref, w1_ref, b1_ref, w2_ref, b2_ref, oT_ref):
    # xT: (11, TILE_B)   w1: (6, 11)  b1: (6, 1)
    # w2: (7, 6)         b2: (7, 1)   oT: (7, TILE_B)
    x = xT_ref[...]
    h = jnp.dot(w1_ref[...], x, preferred_element_type=jnp.float32) + b1_ref[...]
    h = jnp.maximum(h, 0.0)                                   # ReLU (VPU)
    o = jnp.dot(w2_ref[...], h, preferred_element_type=jnp.float32) + b2_ref[...]
    oT_ref[...] = o.astype(oT_ref.dtype)


def generator_forward(x, params, *, tile_b=None):
    """Forward pass of the generator MLP via a batch-tiled Pallas kernel.

    x: (B, nz+1) float32
    params: dict with w1 (6, nz+1), b1 (6,), w2 (7, 6), b2 (7,)  [PyTorch layout]
    returns: (B, 7) float32
    """
    B = x.shape[0]

    # PyTorch nn.Linear weights are (out, in) — exactly what the feature-major
    # formulation o = W2 @ relu(W1 @ x + b1) + b2 wants: no transpose needed.
    w1 = params["w1"].astype(jnp.float32)                 # (6, 11)
    b1 = params["b1"].reshape(H1, 1).astype(jnp.float32)  # (6, 1)
    w2 = params["w2"].astype(jnp.float32)                 # (7, 6)
    b2 = params["b2"].reshape(OUT, 1).astype(jnp.float32) # (7, 1)

    if tile_b is None:
        tile_b = min(_TILE_B_DEFAULT, _round_up(B, _LANE))
    b_padded = _round_up(B, tile_b)
    n_blocks = b_padded // tile_b

    # Feature-major layout with zero-padded batch tail (lane axis = batch).
    xT = jnp.pad(x.astype(jnp.float32), ((0, b_padded - B), (0, 0))).T  # (11, Bp)

    out_t = pl.pallas_call(
        _mlp_kernel,
        out_shape=jax.ShapeDtypeStruct((OUT, b_padded), jnp.float32),
        grid_spec=pltpu.PrefetchScalarGridSpec(
            num_scalar_prefetch=0,
            grid=(n_blocks,),
            in_specs=[
                # Batch-tiled, double-buffered input stream.
                pl.BlockSpec((IN, tile_b), lambda i: (0, i)),
                # Tiny weights/biases: constant block index -> stay resident.
                pl.BlockSpec((H1, IN), lambda i: (0, 0)),
                pl.BlockSpec((H1, 1), lambda i: (0, 0)),
                pl.BlockSpec((OUT, H1), lambda i: (0, 0)),
                pl.BlockSpec((OUT, 1), lambda i: (0, 0)),
            ],
            out_specs=pl.BlockSpec((OUT, tile_b), lambda i: (0, i)),
        ),
        compiler_params=pltpu.CompilerParams(
            dimension_semantics=("parallel",),   # megacore sharding on v7x
        ),
    )(xT, w1, b1, w2, b2)

    # Back to the PyTorch (B, 7) convention; drop padded tail rows.
    return out_t[:, :B].T


def init_params(key):
    """Deterministic parameter init matching nn.Linear shapes (out, in)."""
    k1, k2, k3, k4 = jax.random.split(key, 4)
    lim1 = 1.0 / jnp.sqrt(IN)
    lim2 = 1.0 / jnp.sqrt(H1)
    return {
        "w1": jax.random.uniform(k1, (H1, IN), jnp.float32, -lim1, lim1),
        "b1": jax.random.uniform(k2, (H1,), jnp.float32, -lim1, lim1),
        "w2": jax.random.uniform(k3, (OUT, H1), jnp.float32, -lim2, lim2),
        "b2": jax.random.uniform(k4, (OUT,), jnp.float32, -lim2, lim2),
    }


def _reference(x, p):
    h = jnp.maximum(x @ p["w1"].T + p["b1"], 0.0)
    return h @ p["w2"].T + p["b2"]


if __name__ == "__main__":
    key = jax.random.PRNGKey(0)
    kp, kx1, kx2 = jax.random.split(key, 3)
    params = init_params(kp)

    fwd = jax.jit(generator_forward)

    # Small batch (pads up to one 128-wide lane tile).
    B = 8
    x = jax.random.normal(kx1, (B, IN), jnp.float32)
    out = jax.block_until_ready(fwd(x, params))
    ref = _reference(x, params)
    assert out.shape == (B, OUT)
    assert jnp.allclose(out, ref, atol=1e-5, rtol=1e-5)

    # Non-multiple-of-tile batch exercises the padded-tail path.
    B2 = 300
    x2 = jax.random.normal(kx2, (B2, IN), jnp.float32)
    out2 = jax.block_until_ready(fwd(x2, params))
    ref2 = _reference(x2, params)
    assert out2.shape == (B2, OUT)
    assert jnp.allclose(out2, ref2, atol=1e-5, rtol=1e-5)

    print("KERNEL_OK")
</pallas_src>

<mosaic_0001>
module attributes {stable_mosaic.version = 11 : i64} {
  func.func @_mlp_kernel(%arg0: i32, %arg1: memref<11x128xf32, #tpu.memory_space<vmem>>, %arg2: memref<6x11xf32, #tpu.memory_space<vmem>>, %arg3: memref<6x1xf32, #tpu.memory_space<vmem>>, %arg4: memref<7x6xf32, #tpu.memory_space<vmem>>, %arg5: memref<7x1xf32, #tpu.memory_space<vmem>>, %arg6: memref<7x128xf32, #tpu.memory_space<vmem>>) attributes {dimension_semantics = [#tpu.dimension_semantics<parallel>], iteration_bounds = array<i64: 1>, scalar_prefetch = 0 : i64, scratch_operands = 0 : i64, tpu.core_type = #tpu.core_type<tc>, window_params = [{transform_indices = @transform_0, window_bounds = array<i64: 11, 128>}, {pipeline_mode = #tpu.pipeline_mode<synchronous>, transform_indices = @transform_1, window_bounds = array<i64: 6, 11>}, {pipeline_mode = #tpu.pipeline_mode<synchronous>, transform_indices = @transform_2, window_bounds = array<i64: 6, 1>}, {pipeline_mode = #tpu.pipeline_mode<synchronous>, transform_indices = @transform_3, window_bounds = array<i64: 7, 6>}, {pipeline_mode = #tpu.pipeline_mode<synchronous>, transform_indices = @transform_4, window_bounds = array<i64: 7, 1>}, {transform_indices = @transform_5, window_bounds = array<i64: 7, 128>}]} {
    %c0 = arith.constant 0 : index
    %c0_0 = arith.constant 0 : index
    %0 = vector.load %arg1[%c0, %c0_0] : memref<11x128xf32, #tpu.memory_space<vmem>>, vector<11x128xf32>
    %c0_1 = arith.constant 0 : index
    %c0_2 = arith.constant 0 : index
    %1 = vector.load %arg2[%c0_1, %c0_2] : memref<6x11xf32, #tpu.memory_space<vmem>>, vector<6x11xf32>
    %cst = arith.constant dense<0.000000e+00> : vector<6x128xf32>
    %2 = tpu.matmul %1, %0, %cst {dimension_numbers = #tpu.dot_dimension_numbers<[1], [0], [0], [1], [0, 0, 1, 1], [], []>} : vector<6x11xf32>, vector<11x128xf32>, vector<6x128xf32> -> vector<6x128xf32>
    %c0_3 = arith.constant 0 : index
    %c0_4 = arith.constant 0 : index
    %3 = vector.load %arg3[%c0_3, %c0_4] : memref<6x1xf32, #tpu.memory_space<vmem>>, vector<6x1xf32>
    %4 = vector.broadcast %3 : vector<6x1xf32> to vector<6x128xf32>
    %5 = arith.addf %2, %4 : vector<6x128xf32>
    %cst_5 = arith.constant 0.000000e+00 : f32
    %6 = vector.broadcast %cst_5 : f32 to vector<6x128xf32>
    %7 = arith.maximumf %5, %6 : vector<6x128xf32>
    %c0_6 = arith.constant 0 : index
    %c0_7 = arith.constant 0 : index
    %8 = vector.load %arg4[%c0_6, %c0_7] : memref<7x6xf32, #tpu.memory_space<vmem>>, vector<7x6xf32>
    %cst_8 = arith.constant dense<0.000000e+00> : vector<7x128xf32>
    %9 = tpu.matmul %8, %7, %cst_8 {dimension_numbers = #tpu.dot_dimension_numbers<[1], [0], [0], [1], [0, 0, 1, 1], [], []>} : vector<7x6xf32>, vector<6x128xf32>, vector<7x128xf32> -> vector<7x128xf32>
    %c0_9 = arith.constant 0 : index
    %c0_10 = arith.constant 0 : index
    %10 = vector.load %arg5[%c0_9, %c0_10] : memref<7x1xf32, #tpu.memory_space<vmem>>, vector<7x1xf32>
    %11 = vector.broadcast %10 : vector<7x1xf32> to vector<7x128xf32>
    %12 = arith.addf %9, %11 : vector<7x128xf32>
    %c0_11 = arith.constant 0 : index
    %c0_12 = arith.constant 0 : index
    %13 = vector.load %arg6[%c0_11, %c0_12] : memref<7x128xf32, #tpu.memory_space<vmem>>, vector<7x128xf32>
    tpu.vector_store %arg6[%c0_11, %c0_12], %12 {strides = array<i32>} : memref<7x128xf32, #tpu.memory_space<vmem>>, vector<7x128xf32>,
    return
  }
  func.func @transform_0(%arg0: i32) -> (i32, i32) {
    %c0_i32 = arith.constant 0 : i32
    %c0_i32_0 = arith.constant 0 : i32
    return %c0_i32, %arg0 : i32, i32
  }
  func.func @transform_1(%arg0: i32) -> (i32, i32) {
    %c0_i32 = arith.constant 0 : i32
    %c0_i32_0 = arith.constant 0 : i32
    %c0_i32_1 = arith.constant 0 : i32
    return %c0_i32, %c0_i32_0 : i32, i32
  }
  func.func @transform_2(%arg0: i32) -> (i32, i32) {
    %c0_i32 = arith.constant 0 : i32
    %c0_i32_0 = arith.constant 0 : i32
    %c0_i32_1 = arith.constant 0 : i32
    return %c0_i32, %c0_i32_0 : i32, i32
  }
  func.func @transform_3(%arg0: i32) -> (i32, i32) {
    %c0_i32 = arith.constant 0 : i32
    %c0_i32_0 = arith.constant 0 : i32
    %c0_i32_1 = arith.constant 0 : i32
    return %c0_i32, %c0_i32_0 : i32, i32
  }
  func.func @transform_4(%arg0: i32) -> (i32, i32) {
    %c0_i32 = arith.constant 0 : i32
    %c0_i32_0 = arith.constant 0 : i32
    %c0_i32_1 = arith.constant 0 : i32
    return %c0_i32, %c0_i32_0 : i32, i32
  }
  func.func @transform_5(%arg0: i32) -> (i32, i32) {
    %c0_i32 = arith.constant 0 : i32
    %c0_i32_0 = arith.constant 0 : i32
    return %c0_i32, %arg0 : i32, i32
  }
}

</mosaic_0001>

<bundles_post_ra>
// kernel: generator_forward.1
= control target key start
LH: loop header
LB: loop body
LE: loop exit
PB: predicated region body
PF: predicated region fallthrough
CT: control target
= control target key end

     0   :  { %vm33_vm0 = vcmask 1042432   ;;  %v229_v0 = vmov 0.0|0.0   ;;  %vm230_vm1 = vmmov 1   ;;  %vm231_vm3 = vmmov 0   ;;  %s285_s0 = inlined_call_operand.vmem [shape: f32[11,128], index: 0, kind: input, shape index: {}]   ;;  %s286_s2 = inlined_call_operand.vmem [shape: f32[6,1], index: 2, kind: input, shape index: {}]   ;;  %s287_s1 = inlined_call_operand.vmem [shape: f32[6,11], index: 1, kind: input, shape index: {}]   ;;  %s288_s4 = inlined_call_operand.vmem [shape: f32[7,1], index: 4, kind: input, shape index: {}]   ;;  %s289_s3 = inlined_call_operand.vmem [shape: f32[7,6], index: 3, kind: input, shape index: {}]   ;;  %s290_s5 = inlined_call_operand.vmem [shape: f32[7,128], index: 5, kind: output, shape index: {}]  }
   0x1   :  { %219 = vmatprep.subr.bf16.mxu0 %v229_v0  ;;  %v20_v1 = vld [vmem:[%s285_s0] sm:$0xff]  ;;  %v21_v2 = vld [vmem:[%s285_s0 + $0x8] sm:$0x7]  ;;  %vm221_vm2 = vmpackc.low %vm33_vm0, %vm230_vm1  ;;  %v232_v4 = vmov 0.0   ;;  %v233_v5 = vmov 0   ;;  %vm29_vm4 = vcmask 89088  }
   0x2   :  { %v220_v3 = vpack.c.bf16 %v21_v2, %v20_v1  ;;  %211 = vmatprep.mubr.msk.f32.mxu0 %vm231_vm3, %v232_v4  ;;  %228 = vset.pattern.permute.xlu0 %v233_v5  ;;  %v23_v6 = vld [vmem:[%s286_s2] sm:$0x3f]  ;;  %vm119_vm5 = vcmask 1045504   ;;  %vm115_vm6 = vcmask 48128  }
   0x3   :  { %26 = vperm.xlu0 %228, %v23_v6   ;;  %214 = vmatprep.subr.mxu1 %v232_v4  ;;  %v22_v7 = vld [vmem:[%s287_s1] sm:$0x3f] }
   0x4   :  { %222 = vmatpush3.bf16.msk.msra.mxu0 %vm221_vm2, %v220_v3  ;;  %v109_v8 = vld [vmem:[%s288_s4] sm:$0x7f]  ;;  %216 = vmatprep.mubr.msk.f32.mxu1 %vm231_vm3, %v232_v4 }
   0x5   :  { %v108_v14 = vld [vmem:[%s289_s3] sm:$0x7f] }
   0x7   :  { %212 = vmatmul.mubr.msk.f32.vlgmr.msra.gmra.mrb[0].mxu0 %vm29_vm4, %v22_v7  ;;  %112 = vperm.xlu0 %228, %v109_v8  }
  0x82   :  { %v27_v9 = vpop.permute.xlu0 %26 }
  0x86   :  { %v113_v15 = vpop.permute.xlu0 %112 }
  0xda   :  { %v103_v10 = vpop.f32.mrb[0].mxu0 }
  0xdb   :  { %v104_v11 = vadd.f32 %v103_v10, %v27_v9  ;;  %v213_v12 = vpop.f32.mrb[1].mxu0 }
  0xdd   :  { %v107_v13 = vmax.f32 %v104_v11, 0.0 }
  0xdf   :  { %215 = vmatpush3.msk.msra.mxu1 %vm119_vm5, %v107_v13 }
  0xe0   :  { %217 = vmatmul.mubr.msk.f32.vlgmr.msra.gmra.mrb[0].mxu1 %vm115_vm6, %v108_v14 }
 0x1b3   :  { %v189_v16 = vpop.f32.mrb[0].mxu1 }
 0x1b4   :  { %v190_v17 = vadd.f32 %v189_v16, %v113_v15  ;;  %v218_v18 = vpop.f32.mrb[1].mxu1 }
 0x1b6   :  { %193 = vst [vmem:[%s290_s5] sm:$0x7f] %v190_v17 }

</bundles_post_ra>
